<compile_context>
chip_gen: v5e
topology: v5e:2x2
jax: 0.10.0
libtpu: 0.0.40
codegen_flags: <defaults>
</compile_context>

<pallas_src>
import jax
import jax.numpy as jnp
from jax.experimental import pallas as pl
from jax.experimental.pallas import tpu as pltpu

LN_EPS = 1e-5  # PyTorch LayerNorm default


def mine_kernel(x_ref, w1_ref, w2_ref, m_ref, b1_ref, b2_ref, sc_ref, o_ref):
    # fc1 (bf16 operands on the MXU, f32 accumulate) + bias + ReLU
    h = jnp.dot(x_ref[...].astype(jnp.bfloat16), w1_ref[...],
                preferred_element_type=jnp.float32)
    h = jnp.maximum(h + b1_ref[...], 0.0)

    # LN1 core only (gamma/beta already folded into w2'/b2'); centered two-pass stats.
    mu1 = jnp.mean(h, axis=-1, keepdims=True)
    c1 = h - mu1
    var1 = jnp.mean(c1 * c1, axis=-1, keepdims=True)
    h = c1 * jax.lax.rsqrt(var1 + LN_EPS)

    # fc2 (with LN1 affine folded in) + bias + ReLU
    h = jnp.dot(h.astype(jnp.bfloat16), w2_ref[...],
                preferred_element_type=jnp.float32)
    h = jnp.maximum(h + b2_ref[...], 0.0)
    h2 = h.shape[-1]

    # LN2 + fc3 fold:  out = rstd2 * (sum(h*u) - mu2*S) + C.
    # sum(h*u) (col 0) and sum(h) (col 1) come from one small bf16 MXU matmul,
    # freeing XLU reduction slots; the centered variance stays in f32 on the XLU.
    stats = jnp.dot(h.astype(jnp.bfloat16), m_ref[...],
                    preferred_element_type=jnp.float32)
    s = stats[:, 0:1]
    mu2 = stats[:, 1:2] * (1.0 / h2)
    c2 = h - mu2
    var2 = jnp.mean(c2 * c2, axis=-1, keepdims=True)
    rstd2 = jax.lax.rsqrt(var2 + LN_EPS)
    out = rstd2 * (s - mu2 * sc_ref[0]) + sc_ref[1]
    o_ref[...] = out.astype(o_ref.dtype)


def _round_up(v, m):
    return ((v + m - 1) // m) * m


def _choose_tiling(B, n, h1, h2, cap=1024, vmem_budget=24 << 20):
    """Pick (tile_b, num_tiles):
       - tile cap 1024 rows (amortizes ~0.35us/step overhead), clamped to a
         conservative VMEM budget (f32 worst-case per-row footprint),
       - >=2 grid steps so v7x's two TensorCores can split the "parallel" axis,
       - remainder spread across tiles so padding waste is < 8 rows per tile."""
    per_row = 4 * (2 * n + 2 + h1 + 2 * h2 + 128)  # dbl-buffered x + out + activations
    cap = min(cap, max(8, (vmem_budget // max(per_row, 1)) // 8 * 8))
    B8 = _round_up(max(B, 1), 8)
    num_tiles = max(2, pl.cdiv(B8, cap))
    tile_b = min(cap, _round_up(pl.cdiv(B8, num_tiles), 8))
    num_tiles = max(2, pl.cdiv(B8, tile_b))
    return tile_b, num_tiles


def mine_forward(x, kp, tile_cap=1024):
    """x: (B, n) float32 or bfloat16.  kp: dict from prepare_kernel_params."""
    B, n = x.shape
    h1 = kp["w1"].shape[1]
    h2 = kp["w2"].shape[1]
    tile_b, num_tiles = _choose_tiling(B, n, h1, h2, cap=tile_cap)
    B_pad = tile_b * num_tiles
    if B_pad != B:
        x = jnp.pad(x, ((0, B_pad - B), (0, 0)))

    const = lambda i: (0, 0)  # same block every step -> DMA'd once, stays resident
    out = pl.pallas_call(
        mine_kernel,
        out_shape=jax.ShapeDtypeStruct((B_pad, 1), jnp.float32),
        grid=(num_tiles,),
        in_specs=[
            pl.BlockSpec((tile_b, n), lambda i: (i, 0)),        # x: tiled over batch
            pl.BlockSpec((n, h1), const),                       # w1 (bf16)
            pl.BlockSpec((h1, h2), const),                      # w2' = g1*w2 (bf16)
            pl.BlockSpec((h2, 128), const),                     # M = [u | ones | 0...] (bf16)
            pl.BlockSpec((1, h1), const),                       # b1 (f32)
            pl.BlockSpec((1, h2), const),                       # b2' = be1@w2 + b2 (f32)
            pl.BlockSpec(memory_space=pltpu.MemorySpace.SMEM),  # [S, C] scalars
        ],
        out_specs=pl.BlockSpec((tile_b, 1), lambda i: (i, 0)),
        compiler_params=pltpu.CompilerParams(
            dimension_semantics=("parallel",),   # independent batch rows -> megacore
            vmem_limit_bytes=32 << 20,           # v5e scoped default is only 16 MiB
        ),
    )(x, kp["w1"], kp["w2"], kp["m"], kp["b1"], kp["b2"], kp["scal"])
    return out[:B]


def init_params(key, n):
    """PyTorch-style parameters.  Linear: U(-1/sqrt(fan_in), +).  LayerNorm affine is
    perturbed from the (1, 0) init so the test actually exercises the folded paths."""
    h1, h2 = n // 2, 256
    ks = jax.random.split(key, 10)

    def lin(kw, kb, fan_in, fan_out):
        lim = 1.0 / jnp.sqrt(jnp.float32(fan_in))
        w = jax.random.uniform(kw, (fan_in, fan_out), jnp.float32, -lim, lim)
        b = jax.random.uniform(kb, (1, fan_out), jnp.float32, -lim, lim)
        return w, b

    w1, b1 = lin(ks[0], ks[1], n, h1)
    w2, b2 = lin(ks[2], ks[3], h1, h2)
    w3, b3 = lin(ks[4], ks[5], h2, 1)
    g1 = 1.0 + 0.1 * jax.random.normal(ks[6], (1, h1), jnp.float32)
    be1 = 0.05 * jax.random.normal(ks[7], (1, h1), jnp.float32)
    g2 = 1.0 + 0.1 * jax.random.normal(ks[8], (1, h2), jnp.float32)
    be2 = 0.05 * jax.random.normal(ks[9], (1, h2), jnp.float32)
    return {"w1": w1, "b1": b1, "g1": g1, "be1": be1,
            "w2": w2, "b2": b2, "g2": g2, "be2": be2,
            "w3": w3, "b3": b3.reshape(1)}


def prepare_kernel_params(p):
    """Fold LN affines into neighbouring linears, pack, and pre-cast matmul operands
    to bf16 (done once host-side; nothing is re-cast per grid step)."""
    h2 = p["w2"].shape[1]
    # LN1 affine -> fc2
    w2f = p["g1"].T * p["w2"]                       # (h1, h2)
    b2f = p["be1"] @ p["w2"] + p["b2"]              # (1, h2)
    # LN2 affine + fc3 -> per-row scalar formula
    u = (p["g2"].reshape(-1) * p["w3"].reshape(-1))             # (h2,)
    u_bf16 = u.astype(jnp.bfloat16)
    S = jnp.sum(u_bf16.astype(jnp.float32))        # same u as the matmul uses
    C = jnp.sum(p["be2"].reshape(-1) * p["w3"].reshape(-1)) + p["b3"][0]
    m = jnp.zeros((h2, 128), jnp.float32)
    m = m.at[:, 0].set(u_bf16.astype(jnp.float32)).at[:, 1].set(1.0)
    return {
        "w1": p["w1"].astype(jnp.bfloat16),
        "w2": w2f.astype(jnp.bfloat16),
        "m": m.astype(jnp.bfloat16),
        "b1": p["b1"].astype(jnp.float32),
        "b2": b2f.astype(jnp.float32),
        "scal": jnp.stack([S, C]).astype(jnp.float32),
    }


def mine_reference_f32(x, p):
    """Pure f32 JAX mirror of the PyTorch forward (two-pass LayerNorm)."""
    def ln(h, g, b):
        mu = jnp.mean(h, -1, keepdims=True)
        var = jnp.mean((h - mu) ** 2, -1, keepdims=True)
        return (h - mu) / jnp.sqrt(var + LN_EPS) * g + b
    h = jnp.maximum(x @ p["w1"] + p["b1"], 0.0)
    h = ln(h, p["g1"], p["be1"])
    h = jnp.maximum(h @ p["w2"] + p["b2"], 0.0)
    h = ln(h, p["g2"], p["be2"])
    return h @ p["w3"] + p["b3"]


def mine_reference_mixed(x, kp):
    """Reference that mirrors the kernel's folded / bf16-MXU math exactly."""
    h = jnp.dot(x.astype(jnp.bfloat16), kp["w1"], preferred_element_type=jnp.float32)
    h = jnp.maximum(h + kp["b1"], 0.0)
    mu1 = jnp.mean(h, -1, keepdims=True)
    c1 = h - mu1
    h = c1 * jax.lax.rsqrt(jnp.mean(c1 * c1, -1, keepdims=True) + LN_EPS)
    h = jnp.dot(h.astype(jnp.bfloat16), kp["w2"], preferred_element_type=jnp.float32)
    h = jnp.maximum(h + kp["b2"], 0.0)
    stats = jnp.dot(h.astype(jnp.bfloat16), kp["m"], preferred_element_type=jnp.float32)
    s = stats[:, 0:1]
    mu2 = stats[:, 1:2] / h.shape[-1]
    c2 = h - mu2
    rstd2 = jax.lax.rsqrt(jnp.mean(c2 * c2, -1, keepdims=True) + LN_EPS)
    return rstd2 * (s - mu2 * kp["scal"][0]) + kp["scal"][1]


if __name__ == "__main__":
    key = jax.random.PRNGKey(0)
    k_param, k_x = jax.random.split(key)

    B, n = 8, 32  # small test shapes; real MINE runs should use n >= 256 (lane-dense h1)
    params = init_params(k_param, n)
    kparams = prepare_kernel_params(params)
    x = jax.random.normal(k_x, (B, n), jnp.float32)  # callers may pass bf16 to halve x DMA

    out = jax.block_until_ready(mine_forward(x, kparams))
    assert out.shape == (B, 1), out.shape

    ref_mixed = mine_reference_mixed(x, kparams)   # same folded bf16-matmul math
    ref_f32 = mine_reference_f32(x, params)        # full f32 PyTorch-style math
    err_mixed = float(jnp.max(jnp.abs(out - ref_mixed)))
    err_f32 = float(jnp.max(jnp.abs(out - ref_f32)))
    assert jnp.allclose(out, ref_mixed, atol=2e-3, rtol=2e-3), f"mixed-ref err {err_mixed}"
    assert jnp.allclose(out, ref_f32, atol=1e-1, rtol=1e-1), f"f32-ref err {err_f32}"

    print("KERNEL_OK")
</pallas_src>

<mosaic_0001>
module attributes {stable_mosaic.version = 11 : i64} {
  func.func @mine_kernel(%arg0: i32, %arg1: memref<8x32xf32, #tpu.memory_space<vmem>>, %arg2: memref<32x16xbf16, #tpu.memory_space<vmem>>, %arg3: memref<16x256xbf16, #tpu.memory_space<vmem>>, %arg4: memref<256x128xbf16, #tpu.memory_space<vmem>>, %arg5: memref<1x16xf32, #tpu.memory_space<vmem>>, %arg6: memref<1x256xf32, #tpu.memory_space<vmem>>, %arg7: memref<2xf32, #tpu.memory_space<smem>>, %arg8: memref<8x1xf32, #tpu.memory_space<vmem>>) attributes {dimension_semantics = [#tpu.dimension_semantics<parallel>], iteration_bounds = array<i64: 2>, scalar_prefetch = 0 : i64, scratch_operands = 0 : i64, tpu.core_type = #tpu.core_type<tc>, window_params = [{transform_indices = @transform_0, window_bounds = array<i64: 8, 32>}, {pipeline_mode = #tpu.pipeline_mode<synchronous>, transform_indices = @transform_1, window_bounds = array<i64: 32, 16>}, {pipeline_mode = #tpu.pipeline_mode<synchronous>, transform_indices = @transform_2, window_bounds = array<i64: 16, 256>}, {pipeline_mode = #tpu.pipeline_mode<synchronous>, transform_indices = @transform_3, window_bounds = array<i64: 256, 128>}, {pipeline_mode = #tpu.pipeline_mode<synchronous>, transform_indices = @transform_4, window_bounds = array<i64: 1, 16>}, {pipeline_mode = #tpu.pipeline_mode<synchronous>, transform_indices = @transform_5, window_bounds = array<i64: 1, 256>}, {transform_indices = @transform_6, window_bounds = array<i64: 2>}, {transform_indices = @transform_7, window_bounds = array<i64: 8, 1>}]} {
    %c0 = arith.constant 0 : index
    %c0_0 = arith.constant 0 : index
    %0 = vector.load %arg1[%c0, %c0_0] : memref<8x32xf32, #tpu.memory_space<vmem>>, vector<8x32xf32>
    %1 = arith.truncf %0 : vector<8x32xf32> to vector<8x32xbf16>
    %c0_1 = arith.constant 0 : index
    %c0_2 = arith.constant 0 : index
    %2 = vector.load %arg2[%c0_1, %c0_2] : memref<32x16xbf16, #tpu.memory_space<vmem>>, vector<32x16xbf16>
    %cst = arith.constant dense<0.000000e+00> : vector<8x16xf32>
    %3 = tpu.matmul %1, %2, %cst {dimension_numbers = #tpu.dot_dimension_numbers<[1], [0], [0], [1], [0, 0, 1, 1], [], []>} : vector<8x32xbf16>, vector<32x16xbf16>, vector<8x16xf32> -> vector<8x16xf32>
    %c0_3 = arith.constant 0 : index
    %c0_4 = arith.constant 0 : index
    %4 = vector.load %arg5[%c0_3, %c0_4] : memref<1x16xf32, #tpu.memory_space<vmem>>, vector<1x16xf32>
    %5 = vector.broadcast %4 : vector<1x16xf32> to vector<8x16xf32>
    %6 = arith.addf %3, %5 : vector<8x16xf32>
    %cst_5 = arith.constant 0.000000e+00 : f32
    %7 = vector.broadcast %cst_5 : f32 to vector<8x16xf32>
    %8 = arith.maximumf %6, %7 : vector<8x16xf32>
    %cst_6 = arith.constant dense<0.000000e+00> : vector<8xf32>
    %9 = vector.multi_reduction <add>, %8, %cst_6 [1] : vector<8x16xf32> to vector<8xf32>
    %10 = vector.shape_cast %9 : vector<8xf32> to vector<8x1xf32>
    %cst_7 = arith.constant 1.600000e+01 : f32
    %11 = vector.broadcast %cst_7 : f32 to vector<8x1xf32>
    %12 = arith.divf %10, %11 : vector<8x1xf32>
    %13 = vector.broadcast %12 : vector<8x1xf32> to vector<8x16xf32>
    %14 = arith.subf %8, %13 : vector<8x16xf32>
    %15 = arith.mulf %14, %14 : vector<8x16xf32>
    %cst_8 = arith.constant dense<0.000000e+00> : vector<8xf32>
    %16 = vector.multi_reduction <add>, %15, %cst_8 [1] : vector<8x16xf32> to vector<8xf32>
    %17 = vector.shape_cast %16 : vector<8xf32> to vector<8x1xf32>
    %cst_9 = arith.constant 1.600000e+01 : f32
    %18 = vector.broadcast %cst_9 : f32 to vector<8x1xf32>
    %19 = arith.divf %17, %18 : vector<8x1xf32>
    %cst_10 = arith.constant 9.99999974E-6 : f32
    %20 = vector.broadcast %cst_10 : f32 to vector<8x1xf32>
    %21 = arith.addf %19, %20 : vector<8x1xf32>
    %22 = math.rsqrt %21 : vector<8x1xf32>
    %23 = vector.broadcast %22 : vector<8x1xf32> to vector<8x16xf32>
    %24 = arith.mulf %14, %23 : vector<8x16xf32>
    %25 = arith.truncf %24 : vector<8x16xf32> to vector<8x16xbf16>
    %c0_11 = arith.constant 0 : index
    %c0_12 = arith.constant 0 : index
    %26 = vector.load %arg3[%c0_11, %c0_12] : memref<16x256xbf16, #tpu.memory_space<vmem>>, vector<16x256xbf16>
    %cst_13 = arith.constant dense<0.000000e+00> : vector<8x256xf32>
    %27 = tpu.matmul %25, %26, %cst_13 {dimension_numbers = #tpu.dot_dimension_numbers<[1], [0], [0], [1], [0, 0, 1, 1], [], []>} : vector<8x16xbf16>, vector<16x256xbf16>, vector<8x256xf32> -> vector<8x256xf32>
    %c0_14 = arith.constant 0 : index
    %c0_15 = arith.constant 0 : index
    %28 = vector.load %arg6[%c0_14, %c0_15] : memref<1x256xf32, #tpu.memory_space<vmem>>, vector<1x256xf32>
    %29 = vector.broadcast %28 : vector<1x256xf32> to vector<8x256xf32>
    %30 = arith.addf %27, %29 : vector<8x256xf32>
    %cst_16 = arith.constant 0.000000e+00 : f32
    %31 = vector.broadcast %cst_16 : f32 to vector<8x256xf32>
    %32 = arith.maximumf %30, %31 : vector<8x256xf32>
    %33 = arith.truncf %32 : vector<8x256xf32> to vector<8x256xbf16>
    %c0_17 = arith.constant 0 : index
    %c0_18 = arith.constant 0 : index
    %34 = vector.load %arg4[%c0_17, %c0_18] : memref<256x128xbf16, #tpu.memory_space<vmem>>, vector<256x128xbf16>
    %cst_19 = arith.constant dense<0.000000e+00> : vector<8x128xf32>
    %35 = tpu.matmul %33, %34, %cst_19 {dimension_numbers = #tpu.dot_dimension_numbers<[1], [0], [0], [1], [0, 0, 1, 1], [], []>} : vector<8x256xbf16>, vector<256x128xbf16>, vector<8x128xf32> -> vector<8x128xf32>
    %36 = vector.extract_strided_slice %35 {offsets = [0, 0], sizes = [8, 1], strides = [1, 1]} : vector<8x128xf32> to vector<8x1xf32>
    %37 = vector.extract_strided_slice %35 {offsets = [0, 1], sizes = [8, 1], strides = [1, 1]} : vector<8x128xf32> to vector<8x1xf32>
    %cst_20 = arith.constant 3.906250e-03 : f32
    %38 = vector.broadcast %cst_20 : f32 to vector<8x1xf32>
    %39 = arith.mulf %37, %38 : vector<8x1xf32>
    %40 = vector.broadcast %39 : vector<8x1xf32> to vector<8x256xf32>
    %41 = arith.subf %32, %40 : vector<8x256xf32>
    %42 = arith.mulf %41, %41 : vector<8x256xf32>
    %cst_21 = arith.constant dense<0.000000e+00> : vector<8xf32>
    %43 = vector.multi_reduction <add>, %42, %cst_21 [1] : vector<8x256xf32> to vector<8xf32>
    %44 = vector.shape_cast %43 : vector<8xf32> to vector<8x1xf32>
    %cst_22 = arith.constant 2.560000e+02 : f32
    %45 = vector.broadcast %cst_22 : f32 to vector<8x1xf32>
    %46 = arith.divf %44, %45 : vector<8x1xf32>
    %cst_23 = arith.constant 9.99999974E-6 : f32
    %47 = vector.broadcast %cst_23 : f32 to vector<8x1xf32>
    %48 = arith.addf %46, %47 : vector<8x1xf32>
    %49 = math.rsqrt %48 : vector<8x1xf32>
    %c0_24 = arith.constant 0 : index
    %50 = memref.load %arg7[%c0_24] : memref<2xf32, #tpu.memory_space<smem>>
    %51 = vector.broadcast %50 : f32 to vector<8x1xf32>
    %52 = arith.mulf %39, %51 : vector<8x1xf32>
    %53 = arith.subf %36, %52 : vector<8x1xf32>
    %54 = arith.mulf %49, %53 : vector<8x1xf32>
    %c1 = arith.constant 1 : index
    %55 = memref.load %arg7[%c1] : memref<2xf32, #tpu.memory_space<smem>>
    %56 = vector.broadcast %55 : f32 to vector<8x1xf32>
    %57 = arith.addf %54, %56 : vector<8x1xf32>
    %c0_25 = arith.constant 0 : index
    %c0_26 = arith.constant 0 : index
    %58 = vector.load %arg8[%c0_25, %c0_26] : memref<8x1xf32, #tpu.memory_space<vmem>>, vector<8x1xf32>
    tpu.vector_store %arg8[%c0_25, %c0_26], %57 {strides = array<i32>} : memref<8x1xf32, #tpu.memory_space<vmem>>, vector<8x1xf32>,
    return
  }
  func.func @transform_0(%arg0: i32) -> (i32, i32) {
    %c0_i32 = arith.constant 0 : i32
    %c0_i32_0 = arith.constant 0 : i32
    return %arg0, %c0_i32 : i32, i32
  }
  func.func @transform_1(%arg0: i32) -> (i32, i32) {
    %c0_i32 = arith.constant 0 : i32
    %c0_i32_0 = arith.constant 0 : i32
    %c0_i32_1 = arith.constant 0 : i32
    return %c0_i32, %c0_i32_0 : i32, i32
  }
  func.func @transform_2(%arg0: i32) -> (i32, i32) {
    %c0_i32 = arith.constant 0 : i32
    %c0_i32_0 = arith.constant 0 : i32
    %c0_i32_1 = arith.constant 0 : i32
    return %c0_i32, %c0_i32_0 : i32, i32
  }
  func.func @transform_3(%arg0: i32) -> (i32, i32) {
    %c0_i32 = arith.constant 0 : i32
    %c0_i32_0 = arith.constant 0 : i32
    %c0_i32_1 = arith.constant 0 : i32
    return %c0_i32, %c0_i32_0 : i32, i32
  }
  func.func @transform_4(%arg0: i32) -> (i32, i32) {
    %c0_i32 = arith.constant 0 : i32
    %c0_i32_0 = arith.constant 0 : i32
    %c0_i32_1 = arith.constant 0 : i32
    return %c0_i32, %c0_i32_0 : i32, i32
  }
  func.func @transform_5(%arg0: i32) -> (i32, i32) {
    %c0_i32 = arith.constant 0 : i32
    %c0_i32_0 = arith.constant 0 : i32
    %c0_i32_1 = arith.constant 0 : i32
    return %c0_i32, %c0_i32_0 : i32, i32
  }
  func.func @transform_6(%arg0: i32) -> i32 {
    %c0_i32 = arith.constant 0 : i32
    %c0_i32_0 = arith.constant 0 : i32
    return %c0_i32 : i32
  }
  func.func @transform_7(%arg0: i32) -> (i32, i32) {
    %c0_i32 = arith.constant 0 : i32
    %c0_i32_0 = arith.constant 0 : i32
    return %arg0, %c0_i32 : i32, i32
  }
}

</mosaic_0001>

<bundles_post_ra>
// kernel: tpu_custom_call.1
= control target key start
LH: loop header
LB: loop body
LE: loop exit
PB: predicated region body
PF: predicated region fallthrough
CT: control target
= control target key end

     0   :  { %12 = vsyncpa [#allocation3], 0  ;;  %s1141_s0 = inlined_call_operand.vmem [shape: f32[16,32], index: 0, kind: input, shape index: {}]   ;;  %s1142_s1 = inlined_call_operand.vmem [shape: bf16[32,16], index: 1, kind: input, shape index: {}]   ;;  %s1143_s2 = inlined_call_operand.hbm [shape: bf16[16,256], index: 2, kind: input, shape index: {}]   ;;  %s1144_s3 = inlined_call_operand.hbm [shape: bf16[256,128], index: 3, kind: input, shape index: {}]   ;;  %s1145_s4 = inlined_call_operand.vmem [shape: f32[1,16], index: 4, kind: input, shape index: {}]   ;;  %s1146_s5 = inlined_call_operand.vmem [shape: f32[1,256], index: 5, kind: input, shape index: {}]   ;;  %s1147_s6 = inlined_call_operand.vmem [shape: f32[2], index: 6, kind: input, shape index: {}]   ;;  %s1148_s7 = inlined_call_operand.vmem [shape: f32[16,1], index: 7, kind: output, shape index: {}]  }
   0x1   :  { %13 = vsyncpa [#allocation6], 0 }
   0x2   :  { %14 = vsyncpa [#allocation4], 0  ;;  %s1055_s24 = smov 0  }
   0x3 LB: > { %s217_s27 = sshll.u32 %s1143_s2, 4  ;;  %s1064_s28 = sadd.s32 4294967295, %s1002_s24   ;;  %s1002_s24 = sphi %s1055_s24, %s20_s24   ;;  %s218_s27 = int_to_ptr.hbm [resolvable:$true] %s217_s27 }
   0x4   : > { %p734_p0 = scmp.ge.s32.totalorder %s1002_s24, 1  ;;  %p203_p1 = scmp.lt.s32.totalorder %s1002_s24, 3 }
   0x5   : > { %p873_p2 = scmp.eq.s32.totalorder %s1064_s28, 0  ;;  %s1004_s30 = smov [#allocation2]  }
   0x6   : > { %p1069_p3 = pnand %p734_p0, %p203_p1  ;;  %s219_s8 = sshll.u32 %s1004_s30, 4  ;;  %s220_s8 = int_to_ptr.vmem [resolvable:$true] %s219_s8 }
   0x7   : > { %s231_s11 = sshll.u32 %s1144_s3, 4  ;;  %s1005_s13 = smov [#allocation5]   ;;  %s232_s11 = int_to_ptr.hbm [resolvable:$true] %s231_s11 }
   0x8   : > { %p863_p4 = pneg %p1069_p3  ;;  %s233_s14 = sshll.u32 %s1005_s13, 4  ;;  %s234_s14 = int_to_ptr.vmem [resolvable:$true] %s233_s14 }
   0x9   : > { %s1006_s15 = smov 128   ;;  %s1007_s16 = smov 8  }
   0xa   : > { %p1080_p5 = pnand %p873_p2, %p863_p4  ;;  %s252_s19 = sshll.u32 %s1147_s6, 4  ;;  %s253_s19 = int_to_ptr.vmem [resolvable:$true] %s252_s19 }
   0xb   : > { %s1008_s20 = smov 64   ;;  %s1009_s21 = smov 4  }
   0xc   : > { %866 = dma.hbm_to_vmem [thread:$0]  (!%p1080_p5), %s218_s27, 256, %s220_s8, [#allocation3], %s1006_s15, %s1006_s15, %s1007_s16  }
   0xd   : > { %869 = dma.hbm_to_vmem [thread:$0]  (!%p1080_p5), %s232_s11, 2048, %s234_s14, [#allocation6], %s1008_s20, %s1008_s20, %s1009_s21  }
   0xe   : > { %s1010_s22 = smov [#allocation7]   ;;  %272 = sbr.rel (%p1069_p3) target bundleno = 978 (0x3d2), region = 48 }
   0xf   : > { %872 = dma.vmem_to_smem (!%p1080_p5), %s253_s19, 16, %s1010_s22, [#allocation4]  }
  0x13   : > { %989 = dma.done.wait (%p873_p2), [#allocation3], 256  }
  0x14   : > { %991 = vsyncadd (%p873_p2), [#allocation3], 4294967040 }
  0x15   : > { %993 = dma.done.wait (%p873_p2), [#allocation6], 2048  }
  0x16   : > { %995 = vsyncadd (%p873_p2), [#allocation6], 4294965248 }
  0x17   : > { %997 = dma.done.wait (%p873_p2), [#allocation4], 16  }
  0x18   : > { %999 = vsyncadd (%p873_p2), [#allocation4], 4294967280 }
  0x19   : > { %289 = sfence }
  0x1a   : > { %v832_v0 = vld [vmem:[%s1142_s1 + $0x8] sm:$0xff]  ;;  %p314_p6 = scmp.lt.s32.totalorder %s1064_s28, 1  ;;  %v831_v1 = vld [vmem:[%s1142_s1] sm:$0xff]  ;;  %vm345_vm0 = vcmask 261120   ;;  %vm363_vm1 = vcmask 130048   ;;  %v1011_v10 = vmov 16.0  }
  0x1b   : > { %355 = vmatpush.bf16.msra.mxu0 %v832_v0  ;;  %v900_v4 = vld [vmem:[%s1145_s4] ss:$0 sm:$0xff]  ;;  %901 = vrcp.f32 %v1011_v10  ;;  %v834_v23 = vld [vmem:[#allocation2 + $0x4] sm:$0xf0]  ;;  %v833_v25 = vld [vmem:[#allocation2 + $0x4] sm:$0xf] }
  0x1c   : > { %s1152_s28 = smov (!%p314_p6, %s1064_s28), 1  ;;  %v756_v22 = vld [vmem:[#allocation2] sm:$0xf]  ;;  %v758_v26 = vld [vmem:[#allocation2 + $0x8] sm:$0xf0]  ;;  %v840_v39 = vld [vmem:[#allocation5 + $0x28] sm:$0xff] }
  0x1d   : > { %s743_s29 = sshll.u32 %s1152_s28, 3  ;;  %v757_v24 = vor.u32 %v834_v23, %v756_v22  ;;  %v761_v27 = vor.u32 %v833_v25, %v758_v26  ;;  %v842_v32 = vld [vmem:[#allocation5 + $0x38] sm:$0xff]  ;;  %v841_v35 = vld [vmem:[#allocation5 + $0x30] sm:$0xff]  ;;  %v839_v42 = vld [vmem:[#allocation5 + $0x20] sm:$0xff]  ;;  %s631_s14 = sld [smem:[#allocation7]]  ;;  %vm643_vm10 = vcmask 7168  }
  0x1e   : > { %s317_s9 = scalar_lea.vmem %s1141_s0, %s743_s29  ;;  %v850_v34 = vld [vmem:[#allocation5 + $0x78] sm:$0xff]  ;;  %573 = vmatpush.bf16.msra.mxu3 %v842_v32  ;;  %v849_v37 = vld [vmem:[#allocation5 + $0x70] sm:$0xff]  ;;  %v836_v48 = vld [vmem:[#allocation5 + $0x8] sm:$0xff]  ;;  %s1013_s15 = smov 127  }
  0x1f   : > { %356 = vmatpush.bf16.msra.mxu0 %v831_v1  ;;  %v323_v2 = vld [vmem:[%s317_s9] sm:$0xff]  ;;  %422 = vmatpush.bf16.msra.mxu2 %v757_v24  ;;  %v838_v46 = vld [vmem:[#allocation5 + $0x18] sm:$0xff]  ;;  %v848_v49 = vld [vmem:[#allocation5 + $0x68] sm:$0xff]  ;;  %s828_s16 = sld [smem:[#allocation7 + $0x1]]  ;;  %s321_s19 = scalar_lea.vmem %s1148_s7, %s743_s29 }
  0x20   : > { %v324_v3 = vpack.c.bf16 %v323_v2, %v323_v2  ;;  %586 = vmatpush.bf16.msra.mxu1 %v850_v34  ;;  %v837_v47 = vld [vmem:[#allocation5 + $0x10] sm:$0xff]  ;;  %v835_v50 = vld [vmem:[#allocation5] sm:$0xff]  ;;  %v846_v52 = vld [vmem:[#allocation5 + $0x58] sm:$0xff] }
  0x21   : > { %v902_v11 = vpop.eup %901  ;;  %v847_v51 = vld [vmem:[#allocation5 + $0x60] sm:$0xff]  ;;  %v845_v53 = vld [vmem:[#allocation5 + $0x50] sm:$0xff]  ;;  %v844_v54 = vld [vmem:[#allocation5 + $0x48] sm:$0xff] }
  0x22   : > { %753 = vmatmul.msk.bf16.vlgmr.msra.gmra.mxu0 %vm345_vm0, %v324_v3  ;;  %v368_v12 = vmul.f32 16.0, %v902_v11  ;;  %vm372_vm2 = vweird.f32 %v902_v11  ;;  %574 = vmatpush.bf16.msra.mxu3 %v841_v35  ;;  %v843_v55 = vld [vmem:[#allocation5 + $0x40] sm:$0xff]  ;;  %v396_v56 = vld [vmem:[%s1146_s5] sm:$0x3] }
  0x23   : > { %435 = vmatpush.bf16.msrb.mxu2 %v761_v27  ;;  %v398_v57 = vperm.slane %v396_v56, 0  ;;  %v399_v63 = vperm.slane %v396_v56, 1  ;;  %v632_v10 = vstv %s631_s14 }
  0x24   : > { %v369_v13 = vsub.f32 1.0, %v368_v12  ;;  %587 = vmatpush.bf16.msra.mxu1 %v849_v37 }
  0x26   : > { %v370_v14 = vmul.f32 %v902_v11, %v369_v13  ;;  %575 = vmatpush.bf16.msra.mxu3 %v840_v39 }
  0x28   : > { %v371_v15 = vadd.f32 %v902_v11, %v370_v14  ;;  %588 = vmatpush.bf16.msra.mxu1 %v848_v49 }
  0x2a   : > { %v373_v16 = vsel %vm372_vm2, %v902_v11, %v371_v15  ;;  %576 = vmatpush.bf16.msra.mxu3 %v839_v42 }
  0x2c   : > { %589 = vmatpush.bf16.msra.mxu1 %v847_v51 }
  0x2e   : > { %577 = vmatpush.bf16.msra.mxu3 %v838_v46 }
  0x30   : > { %590 = vmatpush.bf16.msra.mxu1 %v846_v52 }
  0x32   : > { %578 = vmatpush.bf16.msra.mxu3 %v837_v47 }
  0x34   : > { %591 = vmatpush.bf16.msra.mxu1 %v845_v53 }
  0x36   : > { %579 = vmatpush.bf16.msra.mxu3 %v836_v48 }
  0x38   : > { %592 = vmatpush.bf16.msra.mxu1 %v844_v54 }
  0x3a   : > { %580 = vmatpush.bf16.msra.mxu3 %v835_v50 }
  0x3c   : > { %593 = vmatpush.bf16.msra.mxu1 %v843_v55 }
  0x9f   : > { %v358_v5 = vpop.f32.mrf.mxu0 }
  0xa0   : > { %v359_v6 = vadd.f32 %v900_v4, %v358_v5  ;;  %v1012_v5 = vmov 1  }
  0xa1   : > { %898 = vset.pattern.permute.xlu1 %v1012_v5  ;;  %899 = vset.pattern.permute.xlu0 %v1012_v5 }
  0xa2   : > { %v362_v7 = vmax.f32 %v359_v6, 0.0 }
  0xa4   : > { %v364_v8 = vsel %vm363_vm1, %v362_v7, 0.0 }
  0xa5   : > { %365 = vadd.xlane.f32.xlu0 %v364_v8 }
  0xa7   : > { %v360_v9 = vpop.f32.mrf.mxu0 }
 0x118   : > { %v366_v17 = vpop.xlane.xlu0 %365 }
 0x119   : > { %v374_v18 = vmul.f32 %v373_v16, %v366_v17 }
 0x11b   : > { %v375_v19 = vsub.f32 %v362_v7, %v374_v18 }
 0x11d   : > { %v376_v20 = vmul.f32 %v375_v19, %v375_v19 }
 0x11f   : > { %v377_v21 = vsel %vm363_vm1, %v376_v20, 0.0  ;;  %v1014_v20 = vmov 256.0  }
 0x120   : > { %378 = vadd.xlane.f32.xlu0 %v377_v21 }
 0x193   : > { %v379_v28 = vpop.xlane.xlu0 %378 }
 0x194   : > { %v380_v29 = vmul.f32 %v379_v28, %v373_v16 }
 0x196   : > { %v381_v30 = vadd.f32 1e-05, %v380_v29 }
 0x198   : > { %903 = vrsqrt.f32 %v381_v30  ;;  %vm388_vm4 = vweird.f32 %v381_v30 }
 0x199   : > { %905 = vrcp.f32 %v1014_v20 }
 0x19e   : > { %v904_v31 = vpop.eup %903 }
 0x19f   : > { %v383_v33 = vmul.f32 %v904_v31, %v381_v30  ;;  %vm389_vm3 = vweird.f32 %v904_v31  ;;  %v906_v21 = vpop.eup %905 }
 0x1a0   : > { %vm390_vm5 = vmor %vm388_vm4, %vm389_vm3  ;;  %v613_v22 = vmul.f32 256.0, %v906_v21  ;;  %vm617_vm6 = vweird.f32 %v906_v21 }
 0x1a1   : > { %v384_v36 = vmul.f32 %v904_v31, %v383_v33 }
 0x1a2   : > { %v614_v23 = vsub.f32 1.0, %v613_v22 }
 0x1a3   : > { %v385_v38 = vmul.f32 0.5, %v384_v36 }
 0x1a4   : > { %v615_v24 = vmul.f32 %v906_v21, %v614_v23 }
 0x1a5   : > { %v386_v40 = vsub.f32 1.5, %v385_v38  ;;  %v641_v38 = vstv %s828_s16 }
 0x1a6   : > { %v616_v25 = vadd.f32 %v906_v21, %v615_v24 }
 0x1a7   : > { %v387_v41 = vmul.f32 %v904_v31, %v386_v40 }
 0x1a8   : > { %v618_v26 = vsel %vm617_vm6, %v906_v21, %v616_v25 }
 0x1a9   : > { %v391_v43 = vsel %vm390_vm5, %v904_v31, %v387_v41 }
 0x1aa   : > { %v392_v44 = vmul.f32 %v391_v43, %v375_v19 }
 0x1ac   : > { %v393_v45 = vpack.c.bf16 %v392_v44, %v392_v44 }
 0x1ae   : > { %762 = vmatmul.msk.bf16.vlgmr.msra.gmra.mxu2 %vm363_vm1, %v393_v45 }
 0x1be   : > { %763 = vmatmul.msk.bf16.vlgmr.msrb.gmra.mxu2 %vm363_vm1, %v393_v45 }
 0x231   : > { %v424_v58 = vpop.f32.mrf.mxu2 }
 0x232   : > { %v425_v59 = vadd.f32 %v424_v58, %v398_v57 }
 0x234   : > { %v441_v60 = vmax.f32 %v425_v59, 0.0 }
 0x236   : > { %v443_v61 = vpack.c.bf16 %v441_v60, %v441_v60 }
 0x238   : > { %581 = vmatmul.bf16.vlgmr.msra.gmra.mxu3 %v443_v61 }
 0x239   : > { %v426_v62 = vpop.f32.mrf.mxu2 }
 0x241   : > { %v437_v0 = vpop.f32.mrf.mxu2 }
 0x242   : > { %v438_v1 = vadd.f32 %v437_v0, %v399_v63 }
 0x244   : > { %v442_v2 = vmax.f32 %v438_v1, 0.0 }
 0x246   : > { %v444_v3 = vpack.c.bf16 %v442_v2, %v442_v2 }
 0x248   : > { %594 = vmatmul.bf16.vlgmr.msra.gmra.mxu1 %v444_v3 }
 0x249   : > { %v439_v4 = vpop.f32.mrf.mxu2 }
 0x2bb   : > { %v582_v6 = vpop.f32.mrf.mxu3 }
 0x2c3   : > { %v584_v7 = vpop.f32.mrf.mxu3 }
 0x2c5   : > { %v595_v8 = vpop.f32.mrf.mxu1 }
 0x2c6   : > { %v596_v9 = vadd.f32 %v595_v8, %v582_v6 }
 0x2c8   : > { %v599_v11 = vmul.f32 0.00390625, %v596_v9 }
 0x2ca   : > { %602 = vperm.xlu1 %898, %v599_v11   ;;  %v633_v12 = vmul.f32 %v632_v10, %v599_v11 }
 0x2cc   : > { %635 = vrot.lane.b32.xlu2 %v633_v12, %s1013_s15 }
 0x2cd   : > { %v597_v13 = vpop.f32.mrf.mxu1 }
 0x326   : > { %v636_v34 = vpop.permute.xlu2 %635 }
 0x327   : > { %v638_v37 = vsub.f32 %v596_v9, %v636_v34 }
 0x33c   : > { %v603_v14 = vpop.permute.xlu1 %602 }
 0x33d   : > { %v605_v15 = vsub.f32 %v441_v60, %v603_v14  ;;  %v606_v16 = vsub.f32 %v442_v2, %v603_v14 }
 0x33f   : > { %v607_v17 = vmul.f32 %v605_v15, %v605_v15  ;;  %v608_v18 = vmul.f32 %v606_v16, %v606_v16 }
 0x341   : > { %v609_v19 = vadd.f32 %v608_v18, %v607_v17 }
 0x343   : > { %610 = vadd.xlane.f32.xlu1 %v609_v19 }
 0x3b6   : > { %v611_v27 = vpop.xlane.xlu1 %610 }
 0x3b7   : > { %v619_v28 = vmul.f32 %v618_v26, %v611_v27 }
 0x3b9   : > { %v620_v29 = vadd.f32 1e-05, %v619_v28 }
 0x3bb   : > { %907 = vrsqrt.f32 %v620_v29  ;;  %vm627_vm8 = vweird.f32 %v620_v29 }
 0x3c1   : > { %v908_v30 = vpop.eup %907 }
 0x3c2   : > { %v622_v31 = vmul.f32 %v908_v30, %v620_v29  ;;  %vm628_vm7 = vweird.f32 %v908_v30 }
 0x3c3   : > { %vm629_vm9 = vmor %vm627_vm8, %vm628_vm7 }
 0x3c4   : > { %v623_v32 = vmul.f32 %v908_v30, %v622_v31 }
 0x3c6   : > { %v624_v33 = vmul.f32 0.5, %v623_v32 }
 0x3c8   : > { %v625_v35 = vsub.f32 1.5, %v624_v33 }
 0x3ca   : > { %v626_v36 = vmul.f32 %v908_v30, %v625_v35 }
 0x3cc   : > { %v630_v39 = vsel %vm629_vm9, %v908_v30, %v626_v36 }
 0x3cd   : > { %v639_v40 = vmul.f32 %v638_v37, %v630_v39 }
 0x3cf   : > { %v642_v41 = vadd.f32 %v641_v38, %v639_v40 }
 0x3d1   : > { %644 = vst.msk [vmem:[%s321_s19] sm:$0xff] %vm643_vm10, %v642_v41 }
 0x3d2 PF: > { %s20_s24 = sadd.s32 1, %s1002_s24  }
 0x3d3   : > { %p17_p7 = scmp.ge.s32.totalorder %s20_s24, 4  }
 0x3d5   :  { %19 = sbr.rel (!%p17_p7) target bundleno = 3 (0x3), region = 92 }
 0x3da   :  { %664 = vsyncpa [#allocation3], 1 }
 0x3db   :  { %666 = vsyncpa [#allocation3 + $0x1], 1 }
 0x3dc   :  { %667 = vsyncpa [#allocation6], 1 }
 0x3dd   :  { %668 = vsyncpa [#allocation4], 1 }
 0x3de   :  { %670 = vsyncpa [#allocation4 + $0x1], 1 }

</bundles_post_ra>
